<compile_context>
chip_gen: v5e
topology: v5e:2x2
jax: 0.10.0
libtpu: 0.0.40
codegen_flags: <defaults>
</compile_context>

<pallas_src>
import math
import functools

import numpy as np
import jax
import jax.numpy as jnp
from jax import lax
from jax.experimental import pallas as pl
from jax.experimental.pallas import tpu as pltpu


def _rope_cache_kernel(col_ref, o_ref, *, f, exact):
    """Writes one (tile_rows, L) lane-dense block of the rotary cache.

    The block is a folded view of the final (seq, dim) interleaved cache:
    element (r, c) of grid block R holds sequence position
    s = (R*tile_rows + r) * f + c // dim and feature d = c % dim, i.e.
    cos(s * theta_{d//2}) for even d and sin(s * theta_{d//2}) for odd d.

    col_ref is a (3, L) fp32 constant block (host precomputed):
      row 0: theta_{(c % dim) // 2}            (fp64-accurate, cast to fp32)
      row 1: c // dim                          (seq sub-offset inside a row)
      row 2: (c % 2) * pi/2                    (0 -> cos column, pi/2 -> sin)
    """
    rows = o_ref.shape[0]
    cc = col_ref[...]                    # (3, L) fp32
    theta = cc[0:1, :]                   # (1, L)
    sub = cc[1:2, :]                     # (1, L)
    phase = cc[2:3, :]                   # (1, L)

    r0 = pl.program_id(0) * rows
    r = lax.broadcasted_iota(jnp.int32, (rows, 1), 0)
    base_pos = ((r0 + r) * f).astype(jnp.float32)     # (rows, 1)

    pos = base_pos + sub                 # exact in fp32 (both are small ints)
    angle = pos * theta                  # single rounding, same as torch.outer

    if exact:
        # Bit-faithful to the reference: sin is evaluated on the same rounded
        # angle.  Costs a second transcendental per element.
        out = jnp.where(phase > 0.0, jnp.sin(angle), jnp.cos(angle))
    else:
        # One transcendental per element: sin(x) == cos(x - pi/2).  Extra
        # rounding of (angle - pi/2) is <= ulp(angle)/2 (negligible for
        # typical cache lengths; use exact=True for extremely long fp32
        # caches if bit-matching matters).
        out = jnp.cos(angle - phase)

    o_ref[...] = out.astype(o_ref.dtype)


def _choose_tile_rows(r_total, row_bytes, tile_rows=None):
    """Pick the number of folded rows per grid step."""
    if tile_rows is None:
        # ~2 MiB per output block; double-buffered by the pipeline this stays
        # well below scoped-VMEM limits (16 MiB v5e, 32 MiB v6e/v7x defaults).
        tile_rows = max(1, (2 << 20) // row_bytes)
    if r_total > 8:
        # Keep at least 2 grid steps when there is enough work so the
        # "parallel" seq axis can shard across v7x's two TensorCores.
        tile_rows = min(tile_rows, (r_total + 1) // 2)
    tile_rows = min(tile_rows, r_total)
    tile_rows = max(8, ((tile_rows + 7) // 8) * 8)     # sublane granularity
    return tile_rows


def rotary_embedding_forward(max_seq_len, dim, offset=0, *, base=10000,
                             dtype=jnp.float32, tile_rows=None, exact=False):
    """Pallas equivalent of RotaryEmbedding.forward(max_seq_len, offset).

    Returns cache of shape (max_seq_len, dim // 2, 2) with [..., 0] = cos and
    [..., 1] = sin.  `offset` is accepted for signature parity but ignored,
    exactly as in the PyTorch module.  `dtype` plays the role of
    self.inv_freq.dtype (default fp32 -> no downcast)."""
    del offset  # unused in the original forward as well
    assert dim % 2 == 0, "rotary dim must be even"

    d = jnp.dtype(dtype)
    if d in (jnp.dtype(jnp.float16), jnp.dtype(jnp.bfloat16), jnp.dtype(jnp.int8)):
        out_dtype = jnp.bfloat16 if d == jnp.dtype(jnp.bfloat16) else jnp.float16
    else:
        out_dtype = jnp.float32
    # TODO(synk): for 16-bit caches a further ~2x HBM saving is possible by
    # packing each (cos, sin) 16-bit pair into one u32 lane in-kernel; the
    # plain per-element cast below keeps the store path simple and robust.

    # Lane-dense folding: f sequence positions per block row so the block's
    # last dim L = f*dim is a multiple of 128 lanes (unmasked stores).
    L = dim * 128 // math.gcd(dim, 128)
    f = L // dim
    r_total = -(-max_seq_len // f)                     # rows of the folded view

    itemsize = jnp.dtype(out_dtype).itemsize
    tile = _choose_tile_rows(r_total, L * itemsize, tile_rows)
    grid = -(-r_total // tile)
    r_pad = grid * tile                                # padded: full blocks only

    # Host-precomputed per-lane constants (theta in float64, then fp32).
    c = np.arange(L)
    dcol = c % dim
    theta = (1.0 / np.power(float(base), (2.0 * (dcol // 2)) / dim)).astype(np.float32)
    sub = (c // dim).astype(np.float32)
    phase = ((dcol % 2) * (np.pi / 2.0)).astype(np.float32)
    col_const = jnp.asarray(np.stack([theta, sub, phase], axis=0))   # (3, L)

    kernel = functools.partial(_rope_cache_kernel, f=f, exact=exact)

    raw = pl.pallas_call(
        kernel,
        out_shape=jax.ShapeDtypeStruct((r_pad, L), out_dtype),
        grid_spec=pltpu.PrefetchScalarGridSpec(
            num_scalar_prefetch=0,
            grid=(grid,),
            in_specs=[pl.BlockSpec((3, L), lambda i: (0, 0))],
            out_specs=pl.BlockSpec((tile, L), lambda i: (i, 0)),
        ),
        compiler_params=pltpu.CompilerParams(
            dimension_semantics=("parallel",)),
    )(col_const)

    # Free row-major unfold (r_pad, f*dim) -> (r_pad*f, dim); drop the padded
    # tail positions; split the interleaved dim into (dim//2, [cos, sin]).
    cache = raw.reshape(r_pad * f, dim)[:max_seq_len]
    return cache.reshape(max_seq_len, dim // 2, 2)


def _reference(seq_len, n_elem, *, base=10000, dtype=jnp.float32):
    """Pure-JAX transcription of RotaryEmbedding.forward_impl."""
    theta = 1.0 / (base ** (jnp.arange(0, n_elem, 2, dtype=jnp.float32) / n_elem))
    seq_idx = jnp.arange(seq_len, dtype=jnp.float32)
    idx_theta = jnp.outer(seq_idx, theta).astype(jnp.float32)
    cache = jnp.stack([jnp.cos(idx_theta), jnp.sin(idx_theta)], axis=-1)
    d = jnp.dtype(dtype)
    if d in (jnp.dtype(jnp.float16), jnp.dtype(jnp.bfloat16), jnp.dtype(jnp.int8)):
        cache = cache.astype(jnp.bfloat16 if d == jnp.dtype(jnp.bfloat16) else jnp.float16)
    return cache


if __name__ == "__main__":
    # RotaryEmbedding.forward takes only integer arguments (no tensor inputs);
    # the PRNG key is created for interface parity but is unused.
    _ = jax.random.PRNGKey(0)

    # Small config (rotary dim = kv_channels // 2 style): f=4 folding, 1 block.
    dim, seq = 32, 16
    cache = jax.block_until_ready(rotary_embedding_forward(seq, dim))
    ref = _reference(seq, dim)
    assert cache.shape == (seq, dim // 2, 2)
    assert cache.dtype == jnp.float32
    assert jnp.allclose(cache, ref, atol=1e-3, rtol=1e-3)

    # Larger config: f=2 lane-dense folding, 2 grid steps (megacore path).
    dim2, seq2 = 64, 1024
    cache2 = jax.block_until_ready(rotary_embedding_forward(seq2, dim2))
    ref2 = _reference(seq2, dim2)
    assert cache2.shape == (seq2, dim2 // 2, 2)
    assert jnp.allclose(cache2, ref2, atol=2e-3, rtol=2e-3)

    # Non-divisible length: padded tail block + wrapper slice, exact sin path.
    dim3, seq3 = 128, 100
    cache3 = jax.block_until_ready(rotary_embedding_forward(seq3, dim3, exact=True))
    ref3 = _reference(seq3, dim3)
    assert cache3.shape == (seq3, dim3 // 2, 2)
    assert jnp.allclose(cache3, ref3, atol=1e-3, rtol=1e-3)

    # Half-precision cache (inv_freq dtype bf16 -> cache downcast to bf16).
    cache4 = jax.block_until_ready(
        rotary_embedding_forward(seq2, dim2, dtype=jnp.bfloat16))
    ref4 = _reference(seq2, dim2, dtype=jnp.bfloat16)
    assert cache4.dtype == jnp.bfloat16
    assert jnp.allclose(cache4.astype(jnp.float32), ref4.astype(jnp.float32),
                        atol=2e-2, rtol=2e-2)

    print("KERNEL_OK")
</pallas_src>

<mosaic_0001>
module attributes {stable_mosaic.version = 11 : i64} {
  func.func @_rope_cache_kernel(%arg0: i32, %arg1: memref<3x128xf32, #tpu.memory_space<vmem>>, %arg2: memref<8x128xf32, #tpu.memory_space<vmem>>) attributes {dimension_semantics = [#tpu.dimension_semantics<parallel>], iteration_bounds = array<i64: 1>, scalar_prefetch = 0 : i64, scratch_operands = 0 : i64, tpu.core_type = #tpu.core_type<tc>, window_params = [{pipeline_mode = #tpu.pipeline_mode<synchronous>, transform_indices = @transform_0, window_bounds = array<i64: 3, 128>}, {transform_indices = @transform_1, window_bounds = array<i64: 8, 128>}]} {
    %c0 = arith.constant 0 : index
    %c0_0 = arith.constant 0 : index
    %0 = vector.load %arg1[%c0, %c0_0] : memref<3x128xf32, #tpu.memory_space<vmem>>, vector<3x128xf32>
    %1 = vector.extract_strided_slice %0 {offsets = [0, 0], sizes = [1, 128], strides = [1, 1]} : vector<3x128xf32> to vector<1x128xf32>
    %2 = vector.extract_strided_slice %0 {offsets = [1, 0], sizes = [1, 128], strides = [1, 1]} : vector<3x128xf32> to vector<1x128xf32>
    %3 = vector.extract_strided_slice %0 {offsets = [2, 0], sizes = [1, 128], strides = [1, 1]} : vector<3x128xf32> to vector<1x128xf32>
    %c8_i32 = arith.constant 8 : i32
    %4 = arith.muli %arg0, %c8_i32 : i32
    %5 = tpu.iota {dimensions = array<i32: 0>} : vector<8x1xi32>
    %6 = vector.broadcast %4 : i32 to vector<8x1xi32>
    %7 = arith.addi %6, %5 : vector<8x1xi32>
    %c4_i32 = arith.constant 4 : i32
    %8 = vector.broadcast %c4_i32 : i32 to vector<8x1xi32>
    %9 = arith.muli %7, %8 : vector<8x1xi32>
    %10 = arith.sitofp %9 : vector<8x1xi32> to vector<8x1xf32>
    %11 = vector.broadcast %10 : vector<8x1xf32> to vector<8x128xf32>
    %12 = vector.broadcast %2 : vector<1x128xf32> to vector<8x128xf32>
    %13 = arith.addf %11, %12 : vector<8x128xf32>
    %14 = vector.broadcast %1 : vector<1x128xf32> to vector<8x128xf32>
    %15 = arith.mulf %13, %14 : vector<8x128xf32>
    %16 = vector.broadcast %3 : vector<1x128xf32> to vector<8x128xf32>
    %17 = arith.subf %15, %16 : vector<8x128xf32>
    %18 = math.cos %17 : vector<8x128xf32>
    %c0_1 = arith.constant 0 : index
    %c0_2 = arith.constant 0 : index
    %19 = vector.load %arg2[%c0_1, %c0_2] : memref<8x128xf32, #tpu.memory_space<vmem>>, vector<8x128xf32>
    tpu.vector_store %arg2[%c0_1, %c0_2], %18 {strides = array<i32>} : memref<8x128xf32, #tpu.memory_space<vmem>>, vector<8x128xf32>,
    return
  }
  func.func @transform_0(%arg0: i32) -> (i32, i32) {
    %c0_i32 = arith.constant 0 : i32
    %c0_i32_0 = arith.constant 0 : i32
    %c0_i32_1 = arith.constant 0 : i32
    return %c0_i32, %c0_i32_0 : i32, i32
  }
  func.func @transform_1(%arg0: i32) -> (i32, i32) {
    %c0_i32 = arith.constant 0 : i32
    %c0_i32_0 = arith.constant 0 : i32
    return %arg0, %c0_i32 : i32, i32
  }
}

</mosaic_0001>

<bundles_post_ra>
// kernel: tpu_custom_call.1
= control target key start
LH: loop header
LB: loop body
LE: loop exit
PB: predicated region body
PF: predicated region fallthrough
CT: control target
= control target key end

     0   :  { %6 = vsyncpa [#allocation3], 0  ;;  %s352_s0 = inlined_call_operand.hbm [shape: f32[3,128], index: 0, kind: input, shape index: {}]   ;;  %s353_s1 = inlined_call_operand.hbm [shape: f32[8,128], index: 1, kind: output, shape index: {}]  }
   0x1   :  { %7 = vsyncpa [#allocation4], 0  ;;  %s13_s8 = sshll.u32 %s352_s0, 4  ;;  %s273_s9 = smov [#allocation2]   ;;  %s14_s8 = int_to_ptr.hbm [resolvable:$true] %s13_s8 }
   0x2   :  { %s15_s10 = sshll.u32 %s273_s9, 4  ;;  %s16_s10 = int_to_ptr.vmem [resolvable:$true] %s15_s10 }
   0x3   :  { %18 = dma.hbm_to_vmem [thread:$0]  %s14_s8, 64, %s16_s10, [#allocation3]  }
   0x4   :  { %269 = dma.done.wait [#allocation3], 64  }
   0x5   :  { %270 = vsyncadd [#allocation3], 4294967232  ;;  %v25_v0 = vlaneseq  ;;  %v23_v4 = vld [vmem:[#allocation2] sm:$0x7]  ;;  %v274_v22 = vmov 683565275  }
   0x6   :  { %v31_v5 = vperm.slane %v23_v4, 1  ;;  %v33_v6 = vperm.slane %v23_v4, 0  ;;  %v35_v8 = vperm.slane %v23_v4, 2  ;;  %v275_v24 = vmov 2475754826   ;;  %s281_s0 = smov [#allocation5]  }
   0x7   :  { %v26_v1 = vshrl.u32 %v25_v0, 7  ;;  %v276_v26 = vmov 2131351028   ;;  %v277_v28 = vmov 2102212464   ;;  %s197_s11 = sshll.u32 %s281_s0, 4  ;;  %s198_s11 = int_to_ptr.vmem [resolvable:$true] %s197_s11 }
   0x8   :  { %v278_v30 = vmov 920167782   ;;  %v279_v36 = vmov 1326507024   ;;  %s199_s14 = sshll.u32 %s353_s1, 4  ;;  %s200_s14 = int_to_ptr.hbm [resolvable:$true] %s199_s14 }
   0x9   :  { %v29_v2 = vmul.u32 4, %v26_v1 }
   0xb   :  { %v30_v3 = vcvt.s32.f32 %v29_v2 }
   0xd   :  { %v32_v7 = vadd.f32 %v31_v5, %v30_v3 }
   0xf   :  { %v34_v9 = vmul.f32 %v33_v6, %v32_v7 }
  0x11   :  { %v295_v10 = vsub.f32 %v34_v9, %v35_v8 }
  0x13   :  { %v40_v11 = vand.u32 2139095040, %v295_v10  ;;  %v37_v13 = vand.u32 2147483647, %v295_v10  ;;  %vm39_vm12 = vcmp.lt.s32.totalorder %v295_v10, 0 }
  0x15   :  { %v41_v12 = vshrl.u32 %v40_v11, 23  ;;  %v44_v16 = vand.u32 8388607, %v37_v13  ;;  %v280_v11 = vmov 0   ;;  %vm339_vm13 = vcmp.le.f32.partialorder %v37_v13, 0.7853982 }
  0x17   :  { %v209_v14 = vadd.s32 4294967169, %v41_v12  ;;  %v45_v19 = vor.u32 8388608, %v44_v16 }
  0x19   :  { %v47_v15 = vadd.s32 1, %v209_v14  ;;  %v304_v38 = vshll.u32 %v45_v19, 8 }
  0x1b   :  { %vm48_vm0 = vcmp.gt.s32.totalorder %v47_v15, 0  ;;  %v86_v50 = vand.u32 65535, %v304_v38  ;;  %v87_v51 = vshrl.u32 %v304_v38, 16 }
  0x1c   :  { %v49_v17 = vsel %vm48_vm0, %v47_v15, 0 }
  0x1d   :  { %v51_v18 = vand.u32 31, %v49_v17  ;;  %v301_v20 = vshrl.u32 %v49_v17, 5 }
  0x1f   :  { %v52_v21 = vsub.s32 32, %v51_v18  ;;  %v54_v23 = vshll.u32 %v274_v22, %v51_v18  ;;  %v57_v25 = vshll.u32 %v275_v24, %v51_v18  ;;  %v60_v27 = vshll.u32 %v276_v26, %v51_v18 }
  0x20   :  { %v63_v29 = vshll.u32 %v277_v28, %v51_v18  ;;  %v66_v31 = vshll.u32 %v278_v30, %v51_v18  ;;  %vm69_vm1 = vcmp.lt.s32.totalorder %v301_v20, 1  ;;  %vm72_vm2 = vcmp.lt.s32.totalorder %v301_v20, 4 }
  0x21   :  { %v55_v32 = vshrl.u32 %v275_v24, %v52_v21  ;;  %v58_v33 = vshrl.u32 %v276_v26, %v52_v21  ;;  %v61_v34 = vshrl.u32 %v277_v28, %v52_v21  ;;  %v64_v35 = vshrl.u32 %v278_v30, %v52_v21 }
  0x22   :  { %v67_v37 = vshrl.u32 %v279_v36, %v52_v21  ;;  %vm71_vm3 = vcmp.lt.s32.totalorder %v301_v20, 3  ;;  %vm70_vm4 = vcmp.lt.s32.totalorder %v301_v20, 2  ;;  %v53_v58 = vshrl.u32 %v274_v22, %v52_v21 }
  0x23   :  { %v56_v39 = vor.u32 %v55_v32, %v54_v23  ;;  %v59_v40 = vor.u32 %v58_v33, %v57_v25  ;;  %v62_v41 = vor.u32 %v61_v34, %v60_v27  ;;  %v65_v42 = vor.u32 %v64_v35, %v63_v29 }
  0x24   :  { %v68_v43 = vor.u32 %v67_v37, %v66_v31 }
  0x25   :  { %v77_v44 = vsel %vm69_vm1, %v56_v39, %v59_v40  ;;  %v81_v45 = vsel %vm69_vm1, %v59_v40, %v62_v41  ;;  %v78_v46 = vsel %vm72_vm2, %v65_v42, 920167782  ;;  %v73_v7 = vsel %vm69_vm1, %v53_v58, %v56_v39 }
  0x26   :  { %v82_v47 = vsel %vm72_vm2, %v68_v43, 1326507024  ;;  %v79_v48 = vsel %vm71_vm3, %v62_v41, %v78_v46  ;;  %v74_v9 = vsel %vm72_vm2, %v62_v41, 2102212464  ;;  %vm180_vm1 = vweird.f32 %v295_v10 }
  0x27   :  { %v83_v49 = vsel %vm71_vm3, %v65_v42, %v82_v47  ;;  %v80_v52 = vsel %vm70_vm4, %v77_v44, %v79_v48  ;;  %v75_v22 = vsel %vm71_vm3, %v59_v40, %v74_v9 }
  0x28   :  { %v84_v53 = vsel %vm70_vm4, %v81_v45, %v83_v49  ;;  %v110_v56 = vand.u32 65535, %v80_v52  ;;  %v111_v57 = vshrl.u32 %v80_v52, 16  ;;  %v76_v30 = vsel %vm70_vm4, %v73_v7, %v75_v22 }
  0x29   :  { %v88_v54 = vand.u32 65535, %v84_v53  ;;  %v89_v55 = vshrl.u32 %v84_v53, 16  ;;  %v130_v34 = vmul.u32 %v304_v38, %v76_v30 }
  0x2a   :  { %v112_v62 = vmul.u32 %v110_v56, %v86_v50  ;;  %v113_v63 = vmul.u32 %v111_v57, %v86_v50  ;;  %v114_v0 = vmul.u32 %v110_v56, %v87_v51  ;;  %v115_v4 = vmul.u32 %v111_v57, %v87_v51 }
  0x2b   :  { %v90_v59 = vmul.u32 %v88_v54, %v86_v50  ;;  %v91_v60 = vmul.u32 %v89_v55, %v86_v50  ;;  %v92_v61 = vmul.u32 %v88_v54, %v87_v51  ;;  %v93_v1 = vmul.u32 %v89_v55, %v87_v51 }
  0x2c   :  { %v116_v5 = vshll.u32 %v113_v63, 16  ;;  %v118_v6 = vshll.u32 %v114_v0, 16  ;;  %v117_v19 = vshrl.u32 %v113_v63, 16  ;;  %v119_v26 = vshrl.u32 %v114_v0, 16 }
  0x2d   :  { %v94_v2 = vshll.u32 %v91_v60, 16  ;;  %v96_v3 = vshll.u32 %v92_v61, 16  ;;  %v95_v15 = vshrl.u32 %v91_v60, 16  ;;  %v97_v23 = vshrl.u32 %v92_v61, 16 }
  0x2e   :  { %vm120_vm6 = vc.u32 %v112_v62, %v116_v5  ;;  %v122_v14 = vadd.s32 %v116_v5, %v112_v62 }
  0x2f   :  { %vm98_vm5 = vc.u32 %v90_v59, %v94_v2  ;;  %v100_v8 = vadd.s32 %v94_v2, %v90_v59  ;;  %v121_v17 = vsel %vm120_vm6, 1, %v280_v11 }
  0x30   :  { %v99_v12 = vsel %vm98_vm5, 1, %v280_v11  ;;  %v123_v21 = vadd.s32 %v121_v17, %v115_v4  ;;  %vm124_vm8 = vc.u32 %v122_v14, %v118_v6  ;;  %v126_v29 = vadd.s32 %v122_v14, %v118_v6 }
  0x31   :  { %v101_v16 = vadd.s32 %v99_v12, %v93_v1  ;;  %vm102_vm7 = vc.u32 %v100_v8, %v96_v3  ;;  %v125_v25 = vsel %vm124_vm8, 1, %v280_v11 }
  0x32   :  { %v103_v18 = vsel %vm102_vm7, 1, %v280_v11  ;;  %v127_v27 = vadd.s32 %v125_v25, %v123_v21 }
  0x33   :  { %v105_v24 = vadd.s32 %v103_v18, %v101_v16 }
  0x34   :  { %v128_v31 = vadd.s32 %v127_v27, %v117_v19 }
  0x35   :  { %v106_v28 = vadd.s32 %v105_v24, %v95_v15 }
  0x36   :  { %v129_v33 = vadd.s32 %v128_v31, %v119_v26 }
  0x37   :  { %v107_v32 = vadd.s32 %v106_v28, %v97_v23 }
  0x38   :  { %v133_v35 = vadd.s32 1, %v129_v33 }
  0x39   :  { %vm132_vm9 = vc.u32 %v107_v32, %v126_v29  ;;  %v131_v20 = vadd.s32 %v126_v29, %v107_v32 }
  0x3a   :  { %v134_v36 = vsel %vm132_vm9, %v133_v35, %v129_v33 }
  0x3b   :  { %v135_v37 = vadd.s32 %v134_v36, %v130_v34 }
  0x3d   :  { %v136_v39 = vadd.s32 536870912, %v135_v37 }
  0x3f   :  { %v137_v40 = vshrl.u32 %v136_v39, 30 }
  0x41   :  { %v138_v41 = vshll.u32 %v137_v40, 30  ;;  %v161_v61 = vsub.s32 4, %v137_v40 }
  0x43   :  { %v139_v42 = vsub.s32 %v135_v37, %v138_v41  ;;  %v162_v2 = vsel %vm39_vm12, %v161_v61, %v137_v40 }
  0x44   :  { %v164_v5 = vsel %vm339_vm13, 0, %v162_v2 }
  0x45   :  { %vm140_vm10 = vcmp.lt.s32.totalorder %v139_v42, 0  ;;  %v141_v43 = vsub.s32 0, %v139_v42  ;;  %v181_v9 = vand.u32 3, %v164_v5 }
  0x47   :  { %v142_v44 = vsel %vm140_vm10, %v141_v43, %v139_v42  ;;  %vm186_vm14 = vcmp.eq.s32.totalorder %v181_v9, 2  ;;  %vm183_vm15 = vcmp.eq.s32.totalorder %v181_v9, 0  ;;  %vm182_vm0 = vcmp.lt.s32.totalorder %v181_v9, 2 }
  0x48   :  { %v143_v45 = vclz %v142_v44 }
  0x4a   :  { %v210_v46 = vadd.s32 4294967294, %v143_v45 }
  0x4c   :  { %vm211_vm11 = vcmp.lt.s32.totalorder %v210_v46, 0 }
  0x4d   :  { %v146_v47 = vsel %vm211_vm11, 0, %v210_v46 }
  0x4e   :  { %v147_v48 = vsub.s32 32, %v146_v47  ;;  %v148_v49 = vshll.u32 %v139_v42, %v146_v47  ;;  %v151_v50 = vsub.s32 4294967266, %v146_v47 }
  0x50   :  { %v149_v38 = vshrl.u32 %v131_v20, %v147_v48  ;;  %v152_v51 = vadd.s32 127, %v151_v50 }
  0x52   :  { %v150_v52 = vor.u32 %v149_v38, %v148_v49  ;;  %v153_v53 = vshll.u32 %v152_v51, 23 }
  0x54   :  { %v154_v54 = vor.u32 4788187, %v153_v53  ;;  %v157_v55 = vcvt.s32.f32 %v150_v52 }
  0x56   :  { %v155_v56 = vand.u32 2147483647, %v154_v54 }
  0x58   :  { %v158_v57 = vmul.f32 %v157_v55, %v155_v56 }
  0x5a   :  { %v159_v59 = vxor.u32 2147483648, %v158_v57 }
  0x5c   :  { %v160_v60 = vsel %vm39_vm12, %v159_v59, %v158_v57 }
  0x5d   :  { %v163_v62 = vsel %vm339_vm13, %v295_v10, %v160_v60 }
  0x5e   :  { %v165_v63 = vmul.f32 %v163_v62, %v163_v62 }
  0x60   :  { %v166_v0 = vmul.f32 -0.001358992, %v165_v63  ;;  %v173_v1 = vmul.f32 -0.00019511016, %v165_v63 }
  0x62   :  { %v167_v3 = vadd.f32 0.041655596, %v166_v0  ;;  %v174_v4 = vadd.f32 0.008332121, %v173_v1 }
  0x64   :  { %v168_v13 = vmul.f32 %v167_v3, %v165_v63  ;;  %v175_v6 = vmul.f32 %v174_v4, %v165_v63 }
  0x66   :  { %v169_v7 = vadd.f32 -0.4999988, %v168_v13  ;;  %v176_v8 = vadd.f32 -0.16666654, %v175_v6 }
  0x68   :  { %v170_v11 = vmul.f32 %v169_v7, %v165_v63  ;;  %v177_v12 = vmul.f32 %v176_v8, %v165_v63 }
  0x6a   :  { %v171_v14 = vadd.f32 1.0, %v170_v11  ;;  %v178_v15 = vadd.f32 1.0, %v177_v12 }
  0x6c   :  { %v179_v16 = vmul.f32 %v178_v15, %v163_v62  ;;  %v187_v17 = vxor.u32 2147483648, %v171_v14 }
  0x6e   :  { %v184_v18 = vxor.u32 2147483648, %v179_v16  ;;  %v188_v19 = vsel %vm186_vm14, %v187_v17, %v179_v16 }
  0x70   :  { %v185_v21 = vsel %vm183_vm15, %v171_v14, %v184_v18 }
  0x71   :  { %v189_v22 = vsel %vm182_vm0, %v185_v21, %v188_v19 }
  0x72   :  { %v190_v23 = vsel %vm180_vm1, nan, %v189_v22 }
  0x73   :  { %191 = vst [vmem:[#allocation5] sm:$0xff] %v190_v23 }
  0x74   :  { %202 = dma.vmem_to_hbm [thread:$0]  %s198_s11, 128, %s200_s14, [#allocation4]  }
  0x75   :  { %271 = dma.done.wait [#allocation4], 128  }
  0x76   :  { %272 = vsyncadd [#allocation4], 4294967168 }
  0x77   :  { %207 = vsyncpa [#allocation3], 1 }
  0x78   :  { %208 = vsyncpa [#allocation4], 1 }

</bundles_post_ra>
